<compile_context>
chip_gen: v5e
topology: v5e:2x2
jax: 0.10.0
libtpu: 0.0.40
codegen_flags: <defaults>
</compile_context>

<pallas_src>
import functools

import jax
import jax.numpy as jnp
from jax import lax
from jax.experimental import pallas as pl
from jax.experimental.pallas import tpu as pltpu

HIDDEN_LAYERS = [128, 64, 32]
_TOTAL_HIDDEN = sum(HIDDEN_LAYERS)                       # 224
_COL_OFFSETS = (0, HIDDEN_LAYERS[0], HIDDEN_LAYERS[0] + HIDDEN_LAYERS[1])
_GOLDEN = 0x9E3779B9


def _round_up(n, m):
    return (n + m - 1) // m * m


def _clf_dnn_kernel(seed_ref,                              # scalar prefetch (SMEM)
                    f_ref,                                 # (tm, F) fused features
                    w1_ref, b1_ref, w2_ref, b2_ref,
                    w3_ref, b3_ref, w4_ref, b4_ref,
                    out_ref,                               # (1, 1, tm) lane-dense
                    *, drop_thr, use_hw_prng):
    tm = f_ref.shape[0]
    apply_dropout = drop_thr > 0
    thr = jnp.uint32(drop_thr)

    if apply_dropout and use_hw_prng:
        # Distinct PRNG stream per batch tile, otherwise every tile would
        # reuse the same dropout mask.
        pltpu.prng_seed(seed_ref[0] + pl.program_id(0))
    if apply_dropout and not use_hw_prng:
        # Portable fallback (interpret / non-TPU testing): counter-based hash.
        seed_mix = seed_ref[0].astype(jnp.uint32) * jnp.uint32(_GOLDEN)
        row0 = pl.program_id(0) * tm

    def relu_dropout(z, col_off):
        z = jnp.maximum(z, 0.0)
        if not apply_dropout:
            return z
        if use_hw_prng:
            bits = pltpu.bitcast(pltpu.prng_random_bits(z.shape), jnp.uint32)
        else:
            # NOTE: the int32 counter wraps once B * 224 exceeds 2**31
            # (~9.6M rows); fine at typical batches, testing-only path.
            rows = lax.broadcasted_iota(jnp.int32, z.shape, 0) + row0
            cols = lax.broadcasted_iota(jnp.int32, z.shape, 1) + col_off
            h = (rows * _TOTAL_HIDDEN + cols).astype(jnp.uint32) ^ seed_mix
            h = (h ^ (h >> 16)) * jnp.uint32(0x7FEB352D)
            bits = h ^ (h >> 15)
        # P(keep) = 1 - p.  The 1/(1-p) rescale is folded into the *next*
        # layer's weights in the wrapper, so no per-element multiply here.
        return jnp.where(bits >= thr, z, 0.0)

    # --- layer 1: single K=F matmul against the whole W1 (f32 accumulate) ---
    h = jnp.dot(f_ref[...].astype(jnp.bfloat16), w1_ref[...],
                preferred_element_type=jnp.float32) + b1_ref[...]
    h = relu_dropout(h, _COL_OFFSETS[0])

    # --- layer 2 -------------------------------------------------------------
    h = jnp.dot(h.astype(jnp.bfloat16), w2_ref[...],
                preferred_element_type=jnp.float32) + b2_ref[...]
    h = relu_dropout(h, _COL_OFFSETS[1])

    # --- layer 3 -------------------------------------------------------------
    h = jnp.dot(h.astype(jnp.bfloat16), w3_ref[...],
                preferred_element_type=jnp.float32) + b3_ref[...]
    h = relu_dropout(h, _COL_OFFSETS[2])

    # --- head: (tm, 32) . (32,) on the VPU/XLU (multiply + lane reduce), then
    # relayout to a lane-dense (1, tm) row so the sigmoid, the store and the
    # HBM writeback DMA all run on full 128-lane vregs.
    logits = jnp.sum(h * w4_ref[...], axis=-1)            # (tm,)
    logit_row = logits.reshape(1, tm) + b4_ref[...]       # (1, tm)
    out_ref[...] = (1.0 / (1.0 + jnp.exp(-logit_row))).reshape(1, 1, tm)


@functools.partial(jax.jit,
                   static_argnames=("drop_p", "training", "tile_m", "use_hw_prng"))
def clf_dnn_forward(fusion, params, seed, *, drop_p=0.5, training=True,
                    tile_m=None, use_hw_prng=None):
    """CLF_DNN MLP head over pre-fused features.

    fusion: (B, F) output of the fusion model (f32 or bf16; bf16 halves the
            streamed HBM traffic and skips the in-kernel cast).
    params: [(W1, b1), (W2, b2), (W3, b3), (W4, b4)]; W: (in, out), b: (out,).
    """
    (w1, b1), (w2, b2), (w3, b3), (w4, b4) = params
    B, F = fusion.shape
    if w1.shape[0] != F:
        raise ValueError("W1 input dim must match fused feature dim")
    if use_hw_prng is None:
        use_hw_prng = jax.default_backend() == "tpu"

    apply_dropout = bool(training) and float(drop_p) > 0.0
    if apply_dropout and float(drop_p) >= 1.0:
        raise ValueError("drop_p must be in [0, 1)")
    drop_thr = min(int(float(drop_p) * 2 ** 32), 2 ** 32 - 1) if apply_dropout else 0
    # Fold the dropout rescale 1/(1-p) into the *downstream* weights: dropped
    # activations are exactly 0 and kept ones pass through unscaled, so
    # h_drop @ (s*W) == (s*h_drop) @ W.  Removes ~224 f32 vreg muls per tile.
    scale = 1.0 / (1.0 - float(drop_p)) if apply_dropout else 1.0

    # MXU operands in bf16 (f32 accumulation); epilogue math stays f32.
    w1b = w1.astype(jnp.bfloat16)
    w2b = (w2 * scale).astype(jnp.bfloat16)
    w3b = (w3 * scale).astype(jnp.bfloat16)
    w4f = (w4 * scale).astype(jnp.float32).reshape(1, -1)   # head stays on VPU
    b1f = b1.astype(jnp.float32).reshape(1, -1)
    b2f = b2.astype(jnp.float32).reshape(1, -1)
    b3f = b3.astype(jnp.float32).reshape(1, -1)
    b4f = b4.astype(jnp.float32).reshape(1, 1)

    if tile_m is None:
        # Big tiles amortize the ~0.35us/grid-step overhead; >=2 tiles keeps
        # both v7x TensorCores busy when B allows.  ~2048 rows stays well
        # inside the 32 MiB scoped-VMEM budget on v5e/v6e/v7x.  Sweepable.
        n_t = max(2, pl.cdiv(B, 2048))
        tile_m = min(2048, _round_up(pl.cdiv(B, n_t), 8))
    b_pad = _round_up(B, tile_m)
    if b_pad != B:
        fusion = jnp.pad(fusion, ((0, b_pad - B), (0, 0)))
    n_tiles = b_pad // tile_m

    seed = jnp.asarray(seed, dtype=jnp.int32).reshape((1,))
    row = lambda i, s: (i, 0)        # batch-tiled fused input
    const = lambda i, s: (0, 0)      # weights/biases stay VMEM-resident

    kernel = functools.partial(_clf_dnn_kernel, drop_thr=drop_thr,
                               use_hw_prng=bool(use_hw_prng))

    out = pl.pallas_call(
        kernel,
        # Lane-dense output: one (1, tile_m) row per batch tile (reshaped to
        # (B, 1) below) instead of a (tile_m, 1) column -> dense stores/EUP, a
        # contiguous writeback DMA, and no 128x lane padding of the buffer.
        out_shape=jax.ShapeDtypeStruct((n_tiles, 1, tile_m), jnp.float32),
        grid_spec=pltpu.PrefetchScalarGridSpec(
            num_scalar_prefetch=1,                     # seed -> SMEM
            grid=(n_tiles,),
            in_specs=[
                pl.BlockSpec((tile_m, F), row),
                pl.BlockSpec(w1b.shape, const),
                pl.BlockSpec(b1f.shape, const),
                pl.BlockSpec(w2b.shape, const),
                pl.BlockSpec(b2f.shape, const),
                pl.BlockSpec(w3b.shape, const),
                pl.BlockSpec(b3f.shape, const),
                pl.BlockSpec(w4f.shape, const),
                pl.BlockSpec(b4f.shape, const),
            ],
            out_specs=pl.BlockSpec((1, 1, tile_m), lambda i, s: (i, 0, 0)),
        ),
        compiler_params=pltpu.CompilerParams(
            dimension_semantics=("parallel",),   # shard batch tiles across TCs
            vmem_limit_bytes=32 * 1024 * 1024,
        ),
    )(seed, fusion, w1b, b1f, w2b, b2f, w3b, b3f, w4f, b4f)

    return out.reshape(b_pad, 1)[:B]


def make_params(key, fusion_shape):
    """Deterministic nn.Linear-style init: U(-1/sqrt(fan_in), 1/sqrt(fan_in))."""
    layers = [fusion_shape] + HIDDEN_LAYERS + [1]
    params = []
    for in_f, out_f in zip(layers, layers[1:]):
        key, kw, kb = jax.random.split(key, 3)
        bound = 1.0 / (in_f ** 0.5)
        w = jax.random.uniform(kw, (in_f, out_f), jnp.float32, -bound, bound)
        b = jax.random.uniform(kb, (out_f,), jnp.float32, -bound, bound)
        params.append((w, b))
    return params


def clf_dnn_reference(fusion, params):
    """Pure-JAX reference (no dropout) for correctness checking."""
    h = fusion
    for i, (w, b) in enumerate(params):
        h = h @ w + b.reshape(1, -1)
        if i < len(params) - 1:
            h = jnp.maximum(h, 0.0)
    return jax.nn.sigmoid(h)


if __name__ == "__main__":
    key = jax.random.PRNGKey(0)
    kx, ky, kp = jax.random.split(key, 3)

    B, DX, DY = 16, 16, 16
    x = jax.random.normal(kx, (B, DX), jnp.float32)
    y = jax.random.normal(ky, (B, DY), jnp.float32)
    # Concatenation fusion for the demo (fusion_model is external to the MLP).
    fusion = jnp.concatenate([x, y], axis=-1)
    params = make_params(kp, DX + DY)

    # Deterministic check of the matmul/sigmoid pipeline with dropout off.
    out_eval = jax.block_until_ready(
        clf_dnn_forward(fusion, params, 0, training=False))
    ref = clf_dnn_reference(fusion, params)
    assert out_eval.shape == (B, 1)
    assert bool(jnp.allclose(out_eval, ref, atol=5e-2))   # bf16 matmul tolerance

    # Reference module semantics: dropout with train=True.
    out = jax.block_until_ready(clf_dnn_forward(fusion, params, 0, training=True))
    assert out.shape == (B, 1)
    assert bool(jnp.all(jnp.isfinite(out)))
    assert bool(jnp.all((out >= 0.0) & (out <= 1.0)))

    print("KERNEL_OK")
</pallas_src>

<mosaic_0001>
module attributes {stable_mosaic.version = 11 : i64} {
  func.func @_clf_dnn_kernel(%arg0: i32, %arg1: memref<1xi32, #tpu.memory_space<smem>>, %arg2: memref<8x32xf32, #tpu.memory_space<vmem>>, %arg3: memref<32x128xbf16, #tpu.memory_space<vmem>>, %arg4: memref<1x128xf32, #tpu.memory_space<vmem>>, %arg5: memref<128x64xbf16, #tpu.memory_space<vmem>>, %arg6: memref<1x64xf32, #tpu.memory_space<vmem>>, %arg7: memref<64x32xbf16, #tpu.memory_space<vmem>>, %arg8: memref<1x32xf32, #tpu.memory_space<vmem>>, %arg9: memref<1x32xf32, #tpu.memory_space<vmem>>, %arg10: memref<1x1xf32, #tpu.memory_space<vmem>>, %arg11: memref<1x1x8xf32, #tpu.memory_space<vmem>>) attributes {dimension_semantics = [#tpu.dimension_semantics<parallel>], iteration_bounds = array<i64: 2>, scalar_prefetch = 1 : i64, scratch_operands = 0 : i64, tpu.core_type = #tpu.core_type<tc>, window_params = [{transform_indices = @transform_0, window_bounds = array<i64: 8, 32>}, {pipeline_mode = #tpu.pipeline_mode<synchronous>, transform_indices = @transform_1, window_bounds = array<i64: 32, 128>}, {pipeline_mode = #tpu.pipeline_mode<synchronous>, transform_indices = @transform_2, window_bounds = array<i64: 1, 128>}, {pipeline_mode = #tpu.pipeline_mode<synchronous>, transform_indices = @transform_3, window_bounds = array<i64: 128, 64>}, {pipeline_mode = #tpu.pipeline_mode<synchronous>, transform_indices = @transform_4, window_bounds = array<i64: 1, 64>}, {pipeline_mode = #tpu.pipeline_mode<synchronous>, transform_indices = @transform_5, window_bounds = array<i64: 64, 32>}, {pipeline_mode = #tpu.pipeline_mode<synchronous>, transform_indices = @transform_6, window_bounds = array<i64: 1, 32>}, {pipeline_mode = #tpu.pipeline_mode<synchronous>, transform_indices = @transform_7, window_bounds = array<i64: 1, 32>}, {pipeline_mode = #tpu.pipeline_mode<synchronous>, transform_indices = @transform_8, window_bounds = array<i64: 1, 1>}, {transform_indices = @transform_9, window_bounds = array<i64: 1, 1, 8>}]} {
    %c0 = arith.constant 0 : index
    %c0_0 = arith.constant 0 : index
    %0 = vector.load %arg2[%c0, %c0_0] : memref<8x32xf32, #tpu.memory_space<vmem>>, vector<8x32xf32>
    %1 = arith.truncf %0 : vector<8x32xf32> to vector<8x32xbf16>
    %c0_1 = arith.constant 0 : index
    %c0_2 = arith.constant 0 : index
    %2 = vector.load %arg3[%c0_1, %c0_2] : memref<32x128xbf16, #tpu.memory_space<vmem>>, vector<32x128xbf16>
    %cst = arith.constant dense<0.000000e+00> : vector<8x128xf32>
    %3 = tpu.matmul %1, %2, %cst {dimension_numbers = #tpu.dot_dimension_numbers<[1], [0], [0], [1], [0, 0, 1, 1], [], []>} : vector<8x32xbf16>, vector<32x128xbf16>, vector<8x128xf32> -> vector<8x128xf32>
    %c0_3 = arith.constant 0 : index
    %c0_4 = arith.constant 0 : index
    %4 = vector.load %arg4[%c0_3, %c0_4] : memref<1x128xf32, #tpu.memory_space<vmem>>, vector<1x128xf32>
    %5 = vector.broadcast %4 : vector<1x128xf32> to vector<8x128xf32>
    %6 = arith.addf %3, %5 : vector<8x128xf32>
    %cst_5 = arith.constant 0.000000e+00 : f32
    %7 = vector.broadcast %cst_5 : f32 to vector<8x128xf32>
    %8 = arith.maximumf %6, %7 : vector<8x128xf32>
    %9 = arith.truncf %8 : vector<8x128xf32> to vector<8x128xbf16>
    %c0_6 = arith.constant 0 : index
    %c0_7 = arith.constant 0 : index
    %10 = vector.load %arg5[%c0_6, %c0_7] : memref<128x64xbf16, #tpu.memory_space<vmem>>, vector<128x64xbf16>
    %cst_8 = arith.constant dense<0.000000e+00> : vector<8x64xf32>
    %11 = tpu.matmul %9, %10, %cst_8 {dimension_numbers = #tpu.dot_dimension_numbers<[1], [0], [0], [1], [0, 0, 1, 1], [], []>} : vector<8x128xbf16>, vector<128x64xbf16>, vector<8x64xf32> -> vector<8x64xf32>
    %c0_9 = arith.constant 0 : index
    %c0_10 = arith.constant 0 : index
    %12 = vector.load %arg6[%c0_9, %c0_10] : memref<1x64xf32, #tpu.memory_space<vmem>>, vector<1x64xf32>
    %13 = vector.broadcast %12 : vector<1x64xf32> to vector<8x64xf32>
    %14 = arith.addf %11, %13 : vector<8x64xf32>
    %cst_11 = arith.constant 0.000000e+00 : f32
    %15 = vector.broadcast %cst_11 : f32 to vector<8x64xf32>
    %16 = arith.maximumf %14, %15 : vector<8x64xf32>
    %17 = arith.truncf %16 : vector<8x64xf32> to vector<8x64xbf16>
    %c0_12 = arith.constant 0 : index
    %c0_13 = arith.constant 0 : index
    %18 = vector.load %arg7[%c0_12, %c0_13] : memref<64x32xbf16, #tpu.memory_space<vmem>>, vector<64x32xbf16>
    %cst_14 = arith.constant dense<0.000000e+00> : vector<8x32xf32>
    %19 = tpu.matmul %17, %18, %cst_14 {dimension_numbers = #tpu.dot_dimension_numbers<[1], [0], [0], [1], [0, 0, 1, 1], [], []>} : vector<8x64xbf16>, vector<64x32xbf16>, vector<8x32xf32> -> vector<8x32xf32>
    %c0_15 = arith.constant 0 : index
    %c0_16 = arith.constant 0 : index
    %20 = vector.load %arg8[%c0_15, %c0_16] : memref<1x32xf32, #tpu.memory_space<vmem>>, vector<1x32xf32>
    %21 = vector.broadcast %20 : vector<1x32xf32> to vector<8x32xf32>
    %22 = arith.addf %19, %21 : vector<8x32xf32>
    %cst_17 = arith.constant 0.000000e+00 : f32
    %23 = vector.broadcast %cst_17 : f32 to vector<8x32xf32>
    %24 = arith.maximumf %22, %23 : vector<8x32xf32>
    %c0_18 = arith.constant 0 : index
    %c0_19 = arith.constant 0 : index
    %25 = vector.load %arg9[%c0_18, %c0_19] : memref<1x32xf32, #tpu.memory_space<vmem>>, vector<1x32xf32>
    %26 = vector.broadcast %25 : vector<1x32xf32> to vector<8x32xf32>
    %27 = arith.mulf %24, %26 : vector<8x32xf32>
    %cst_20 = arith.constant dense<0.000000e+00> : vector<8xf32>
    %28 = vector.multi_reduction <add>, %27, %cst_20 [1] : vector<8x32xf32> to vector<8xf32>
    %29 = vector.shape_cast %28 : vector<8xf32> to vector<1x8xf32>
    %c0_21 = arith.constant 0 : index
    %c0_22 = arith.constant 0 : index
    %30 = vector.load %arg10[%c0_21, %c0_22] : memref<1x1xf32, #tpu.memory_space<vmem>>, vector<1x1xf32>
    %31 = vector.broadcast %30 : vector<1x1xf32> to vector<1x8xf32>
    %32 = arith.addf %29, %31 : vector<1x8xf32>
    %cst_23 = arith.constant 0.000000e+00 : f32
    %33 = vector.broadcast %cst_23 : f32 to vector<1x8xf32>
    %34 = arith.subf %33, %32 : vector<1x8xf32>
    %35 = math.exp %34 : vector<1x8xf32>
    %cst_24 = arith.constant 1.000000e+00 : f32
    %36 = vector.broadcast %cst_24 : f32 to vector<1x8xf32>
    %37 = arith.addf %36, %35 : vector<1x8xf32>
    %cst_25 = arith.constant 1.000000e+00 : f32
    %38 = vector.broadcast %cst_25 : f32 to vector<1x8xf32>
    %39 = arith.divf %38, %37 : vector<1x8xf32>
    %40 = vector.shape_cast %39 : vector<1x8xf32> to vector<1x1x8xf32>
    %c0_26 = arith.constant 0 : index
    %c0_27 = arith.constant 0 : index
    %c0_28 = arith.constant 0 : index
    %41 = vector.load %arg11[%c0_26, %c0_27, %c0_28] : memref<1x1x8xf32, #tpu.memory_space<vmem>>, vector<1x1x8xf32>
    tpu.vector_store %arg11[%c0_26, %c0_27, %c0_28], %40 {strides = array<i32>} : memref<1x1x8xf32, #tpu.memory_space<vmem>>, vector<1x1x8xf32>,
    return
  }
  func.func @transform_0(%arg0: i32, %arg1: memref<1xi32, #tpu.memory_space<smem>>) -> (i32, i32) {
    %c0_i32 = arith.constant 0 : i32
    %c0_i32_0 = arith.constant 0 : i32
    return %arg0, %c0_i32 : i32, i32
  }
  func.func @transform_1(%arg0: i32, %arg1: memref<1xi32, #tpu.memory_space<smem>>) -> (i32, i32) {
    %c0_i32 = arith.constant 0 : i32
    %c0_i32_0 = arith.constant 0 : i32
    %c0_i32_1 = arith.constant 0 : i32
    return %c0_i32, %c0_i32_0 : i32, i32
  }
  func.func @transform_2(%arg0: i32, %arg1: memref<1xi32, #tpu.memory_space<smem>>) -> (i32, i32) {
    %c0_i32 = arith.constant 0 : i32
    %c0_i32_0 = arith.constant 0 : i32
    %c0_i32_1 = arith.constant 0 : i32
    return %c0_i32, %c0_i32_0 : i32, i32
  }
  func.func @transform_3(%arg0: i32, %arg1: memref<1xi32, #tpu.memory_space<smem>>) -> (i32, i32) {
    %c0_i32 = arith.constant 0 : i32
    %c0_i32_0 = arith.constant 0 : i32
    %c0_i32_1 = arith.constant 0 : i32
    return %c0_i32, %c0_i32_0 : i32, i32
  }
  func.func @transform_4(%arg0: i32, %arg1: memref<1xi32, #tpu.memory_space<smem>>) -> (i32, i32) {
    %c0_i32 = arith.constant 0 : i32
    %c0_i32_0 = arith.constant 0 : i32
    %c0_i32_1 = arith.constant 0 : i32
    return %c0_i32, %c0_i32_0 : i32, i32
  }
  func.func @transform_5(%arg0: i32, %arg1: memref<1xi32, #tpu.memory_space<smem>>) -> (i32, i32) {
    %c0_i32 = arith.constant 0 : i32
    %c0_i32_0 = arith.constant 0 : i32
    %c0_i32_1 = arith.constant 0 : i32
    return %c0_i32, %c0_i32_0 : i32, i32
  }
  func.func @transform_6(%arg0: i32, %arg1: memref<1xi32, #tpu.memory_space<smem>>) -> (i32, i32) {
    %c0_i32 = arith.constant 0 : i32
    %c0_i32_0 = arith.constant 0 : i32
    %c0_i32_1 = arith.constant 0 : i32
    return %c0_i32, %c0_i32_0 : i32, i32
  }
  func.func @transform_7(%arg0: i32, %arg1: memref<1xi32, #tpu.memory_space<smem>>) -> (i32, i32) {
    %c0_i32 = arith.constant 0 : i32
    %c0_i32_0 = arith.constant 0 : i32
    %c0_i32_1 = arith.constant 0 : i32
    return %c0_i32, %c0_i32_0 : i32, i32
  }
  func.func @transform_8(%arg0: i32, %arg1: memref<1xi32, #tpu.memory_space<smem>>) -> (i32, i32) {
    %c0_i32 = arith.constant 0 : i32
    %c0_i32_0 = arith.constant 0 : i32
    %c0_i32_1 = arith.constant 0 : i32
    return %c0_i32, %c0_i32_0 : i32, i32
  }
  func.func @transform_9(%arg0: i32, %arg1: memref<1xi32, #tpu.memory_space<smem>>) -> (i32, i32, i32) {
    %c0_i32 = arith.constant 0 : i32
    %c0_i32_0 = arith.constant 0 : i32
    %c0_i32_1 = arith.constant 0 : i32
    return %arg0, %c0_i32, %c0_i32_0 : i32, i32, i32
  }
}

</mosaic_0001>

<bundles_post_ra>
// kernel: clf_dnn_forward.1
= control target key start
LH: loop header
LB: loop body
LE: loop exit
PB: predicated region body
PF: predicated region fallthrough
CT: control target
= control target key end

     0   :  { %s763_s14 = smov 0   ;;  %s840_s0 = inlined_call_operand.<no memory space> [shape: s32[1], index: 0, kind: input, shape index: {}]   ;;  %s841_s1 = inlined_call_operand.vmem [shape: f32[16,32], index: 1, kind: input, shape index: {}]   ;;  %s842_s2 = inlined_call_operand.vmem [shape: bf16[32,128], index: 2, kind: input, shape index: {}]   ;;  %s843_s3 = inlined_call_operand.vmem [shape: f32[1,128], index: 3, kind: input, shape index: {}]   ;;  %s844_s4 = inlined_call_operand.vmem [shape: bf16[128,64], index: 4, kind: input, shape index: {}]   ;;  %s845_s5 = inlined_call_operand.vmem [shape: f32[1,64], index: 5, kind: input, shape index: {}]   ;;  %s846_s6 = inlined_call_operand.vmem [shape: bf16[64,32], index: 6, kind: input, shape index: {}]   ;;  %s847_s7 = inlined_call_operand.vmem [shape: f32[1,32], index: 7, kind: input, shape index: {}]   ;;  %s848_s8 = inlined_call_operand.vmem [shape: f32[1,32], index: 8, kind: input, shape index: {}]   ;;  %s849_s9 = inlined_call_operand.<no memory space> [shape: f32[1,1], index: 9, kind: input, shape index: {}]   ;;  %s850_s10 = inlined_call_operand.vmem [shape: f32[2,1,8], index: 10, kind: output, shape index: {}]  }
   0x1   :  { %v16_v0 = vstv %s849_s9 }
   0x2   :  { %17 = vst [vmem:[#allocation4] sm:$0x1] %v16_v0 }
   0x3 LB: > { %s598_s15 = sadd.s32 4294967295, %s702_s14   ;;  %p602_p0 = scmp.ge.s32.totalorder %s702_s14, 1  ;;  %s702_s14 = sphi %s763_s14, %s23_s14  }
   0x4   : > { %p290_p1 = scmp.lt.s32.totalorder %s702_s14, 3 }
   0x6   : > { %p291_p2 = pnand %p602_p0, %p290_p1 }
   0x7   : > { %p323_p3 = scmp.lt.s32.totalorder (!%p291_p2), %s598_s15, 1 }
   0x8   : > { %294 = sbr.rel (%p291_p2) target bundleno = 575 (0x23f), region = 56 }
   0xd   : > { %v665_v1 = vld [vmem:[%s842_s2 + $0x8] sm:$0xff]  ;;  %v673_v2 = vld [vmem:[%s844_s4 + $0x38] sm:$0xff]  ;;  %v664_v3 = vld [vmem:[%s842_s2] sm:$0xff]  ;;  %s852_s15 = smov (!%p323_p3, %s598_s15), 1  ;;  %vm353_vm0 = vcmask 261120   ;;  %v704_v24 = vmov 0   ;;  %v545_v49 = vlaneseq }
   0xe   : > { %363 = vmatpush.bf16.msra.mxu0 %v665_v1  ;;  %440 = vmatpush.bf16.msra.mxu1 %v673_v2  ;;  %v672_v4 = vld [vmem:[%s844_s4 + $0x30] sm:$0xff]  ;;  %s603_s23 = sshll.u32 %s852_s15, 3  ;;  %v671_v6 = vld [vmem:[%s844_s4 + $0x28] sm:$0xff]  ;;  %v670_v8 = vld [vmem:[%s844_s4 + $0x20] sm:$0xff]  ;;  %vm491_vm1 = vcmask 523264   ;;  %s329_s9 = scalar_lea.vmem %s850_s10, %s852_s15  ;;  %vm549_vm6 = vcmask 57344  }
   0xf   : > { %s326_s0 = scalar_lea.vmem %s841_s1, %s603_s23  ;;  %v669_v9 = vld [vmem:[%s844_s4 + $0x18] sm:$0xff]  ;;  %v668_v10 = vld [vmem:[%s844_s4 + $0x10] sm:$0xff]  ;;  %v667_v11 = vld [vmem:[%s844_s4 + $0x8] sm:$0xff]  ;;  %687 = vset.pattern.permute.xlu0 %v704_v24  ;;  %v546_v54 = vand.u32 127, %v545_v49 }
  0x10   : > { %v331_v5 = vld [vmem:[%s326_s0] sm:$0xff]  ;;  %v677_v13 = vld [vmem:[%s846_s6 + $0x18] sm:$0xff]  ;;  %v676_v14 = vld [vmem:[%s846_s6 + $0x10] sm:$0xff] }
  0x11   : > { %v332_v7 = vpack.c.bf16 %v331_v5, %v331_v5  ;;  %v666_v12 = vld [vmem:[%s844_s4] sm:$0xff]  ;;  %499 = vmatpush.bf16.msra.mxu2 %v677_v13  ;;  %v675_v21 = vld [vmem:[%s846_s6 + $0x8] sm:$0xff] }
  0x12   : > { %364 = vmatpush.bf16.msra.mxu0 %v664_v3  ;;  %441 = vmatpush.bf16.msra.mxu1 %v672_v4  ;;  %v688_v15 = vld [vmem:[%s843_s3] ss:$0 sm:$0xff] }
  0x13   : > { %v674_v22 = vld [vmem:[%s846_s6] sm:$0xff] }
  0x14   : > { %v517_v23 = vld [vmem:[#allocation4] sm:$0x1] }
  0x15   : > { %612 = vmatmul.msk.bf16.vlgmr.msra.gmra.mxu0 %vm353_vm0, %v332_v7  ;;  %500 = vmatpush.bf16.msra.mxu2 %v676_v14  ;;  %v689_v25 = vld [vmem:[%s845_s5] ss:$0 sm:$0xff] }
  0x16   : > { %442 = vmatpush.bf16.msra.mxu1 %v671_v6  ;;  %520 = vperm.xlu0 %687, %v517_v23   ;;  %v690_v31 = vld [vmem:[%s847_s7] ss:$0 sm:$0xff] }
  0x17   : > { %v691_v34 = vld [vmem:[%s848_s8] ss:$0 sm:$0xff] }
  0x19   : > { %501 = vmatpush.bf16.msra.mxu2 %v675_v21 }
  0x1a   : > { %443 = vmatpush.bf16.msra.mxu1 %v670_v8 }
  0x1d   : > { %502 = vmatpush.bf16.msra.mxu2 %v674_v22 }
  0x1e   : > { %444 = vmatpush.bf16.msra.mxu1 %v669_v9 }
  0x22   : > { %445 = vmatpush.bf16.msra.mxu1 %v668_v10 }
  0x26   : > { %446 = vmatpush.bf16.msra.mxu1 %v667_v11 }
  0x2a   : > { %447 = vmatpush.bf16.msra.mxu1 %v666_v12 }
  0x88   : > { %v521_v39 = vpop.permute.xlu0 %520 }
  0x89   : > { %v523_v40 = vperm.slane %v521_v39, 0 }
  0x92   : > { %v366_v16 = vpop.f32.mrf.mxu0 }
  0x93   : > { %v367_v17 = vadd.f32 %v688_v15, %v366_v16 }
  0x95   : > { %v370_v18 = vmax.f32 %v367_v17, 0.0 }
  0x97   : > { %v371_v19 = vpack.c.bf16 %v370_v18, %v370_v18 }
  0x99   : > { %448 = vmatmul.bf16.vlgmr.msra.gmra.mxu1 %v371_v19 }
  0x9a   : > { %v368_v20 = vpop.f32.mrf.mxu0 }
 0x116   : > { %v449_v26 = vpop.f32.mrf.mxu1 }
 0x117   : > { %v450_v27 = vadd.f32 %v689_v25, %v449_v26 }
 0x119   : > { %v453_v28 = vmax.f32 %v450_v27, 0.0 }
 0x11b   : > { %v454_v29 = vpack.c.bf16 %v453_v28, %v453_v28 }
 0x11d   : > { %661 = vmatmul.msk.bf16.vlgmr.msra.gmra.mxu2 %vm491_vm1, %v454_v29 }
 0x11e   : > { %v451_v30 = vpop.f32.mrf.mxu1 }
 0x1a0   : > { %v504_v32 = vpop.f32.mrf.mxu2 }
 0x1a1   : > { %v505_v33 = vadd.f32 %v690_v31, %v504_v32 }
 0x1a3   : > { %v508_v35 = vmax.f32 %v505_v33, 0.0 }
 0x1a5   : > { %v513_v36 = vmul.f32 %v691_v34, %v508_v35 }
 0x1a7   : > { %v514_v37 = vsel %vm353_vm0, %v513_v36, 0.0 }
 0x1a8   : > { %v506_v38 = vpop.f32.mrf.mxu2  ;;  %515 = vadd.xlane.f32.xlu0 %v514_v37 }
 0x21b   : > { %v516_v41 = vpop.xlane.xlu0 %515 }
 0x21c   : > { %v524_v42 = vadd.f32 %v523_v40, %v516_v41 }
 0x21e   : > { %v525_v43 = vsub.f32 0.0, %v524_v42 }
 0x220   : > { %v526_v44 = vmul.f32 1.442695, %v525_v43 }
 0x222   : > { %692 = vpow2.f32 %v526_v44 }
 0x228   : > { %v693_v45 = vpop.eup %692 }
 0x229   : > { %v528_v46 = vadd.f32 1.0, %v693_v45 }
 0x22b   : > { %694 = vrcp.f32 %v528_v46  ;;  %v540_v51 = vand.u32 2147483648, %v528_v46  ;;  %v538_v53 = vand.u32 2147483647, %v528_v46  ;;  %vm534_vm3 = vweird.f32 %v528_v46 }
 0x22d   : > { %v541_v56 = vor.u32 1.1754944e-38, %v540_v51  ;;  %vm539_vm5 = vcmp.eq.f32.partialorder %v538_v53, 8.507059e+37 }
 0x231   : > { %v695_v47 = vpop.eup %694 }
 0x232   : > { %v530_v48 = vmul.f32 %v695_v47, %v528_v46  ;;  %vm535_vm2 = vweird.f32 %v695_v47 }
 0x233   : > { %vm536_vm4 = vmor %vm534_vm3, %vm535_vm2 }
 0x234   : > { %v531_v50 = vsub.f32 1.0, %v530_v48 }
 0x236   : > { %v532_v52 = vmul.f32 %v695_v47, %v531_v50 }
 0x238   : > { %v533_v55 = vadd.f32 %v695_v47, %v532_v52 }
 0x23a   : > { %v537_v57 = vsel %vm536_vm4, %v695_v47, %v533_v55 }
 0x23b   : > { %v542_v58 = vsel %vm539_vm5, %v541_v56, %v537_v57 }
 0x23c   : > { %v547_v59 = vperm.slane %v542_v58, %v546_v54 }
 0x23e   : > { %550 = vst.msk [vmem:[%s329_s9] sm:$0x1] %vm549_vm6, %v547_v59 }
 0x23f PF: > { %s23_s14 = sadd.s32 1, %s702_s14  }
 0x240   : > { %p20_p4 = scmp.ge.s32.totalorder %s23_s14, 4  }
 0x242   :  { %22 = sbr.rel (!%p20_p4) target bundleno = 3 (0x3), region = 86 }

</bundles_post_ra>
